<compile_context>
chip_gen: v5e
topology: v5e:2x2
jax: 0.10.0
libtpu: 0.0.40
codegen_flags: <defaults>
</compile_context>

<pallas_src>
import functools

import jax
import jax.numpy as jnp
from jax.experimental import pallas as pl
from jax.experimental.pallas import tpu as pltpu

_LANE = 128
_SUBLANE = 8
# Byte budget for the double-buffered *input* tiles. Conservative enough for
# every generation once vmem_limit_bytes below is applied.
_INPUT_VMEM_BUDGET = 16 * 1024 * 1024
# Safe on v5e/v6e (128 MiB physical) and v7x (64 MiB physical).
_VMEM_LIMIT_BYTES = 32 * 1024 * 1024


def _round_up(x, m):
    return (x + m - 1) // m * m


def _gap_single_pass_kernel(x_ref, o_ref, *, inv_hw):
    """Whole HW extent in one block: x_ref (TM, HW) -> o_ref (TM, 1)."""
    s = jnp.sum(x_ref[...].astype(jnp.float32), axis=-1, keepdims=True)
    o_ref[...] = (s * inv_hw).astype(o_ref.dtype)


def _gap_accum_kernel(x_ref, o_ref, acc_ref, *, hw, tk, inv_hw):
    """HW-tiled reduction with resident f32 accumulator (P3 pattern).

    grid = (nc_tiles, hw_tiles); hw axis is last and sequential.
    x_ref: (TM, TK) tile; o_ref: (TM, 1); acc_ref: (TM, 1) f32 scratch.
    """
    k = pl.program_id(1)

    @pl.when(k == 0)
    def _():
        acc_ref[...] = jnp.zeros_like(acc_ref)

    # Mask columns past the true HW extent (last, possibly partial, HW tile).
    col = jax.lax.broadcasted_iota(jnp.int32, x_ref.shape, 1) + k * tk
    xv = jnp.where(col < hw, x_ref[...].astype(jnp.float32), 0.0)
    acc_ref[...] += jnp.sum(xv, axis=-1, keepdims=True)

    @pl.when(k == pl.num_programs(1) - 1)
    def _():
        o_ref[...] = (acc_ref[...] * inv_hw).astype(o_ref.dtype)


def global_avg_pool2d(x, *, force_hw_tiling=False, hw_tile=None):
    """x: (N, C, H, W) -> (N, C, 1, 1), mean over H, W."""
    n, c, h, w = x.shape
    nc, hw = n * c, h * w
    dtype_bytes = jnp.dtype(x.dtype).itemsize
    inv_hw = 1.0 / float(hw)

    x2d = x.reshape(nc, hw)  # glue reshape; the reduction happens in-kernel

    # VMEM sizing: each row lane-pads to a multiple of 128 in VMEM.
    padded_hw = _round_up(hw, _LANE)
    row_bytes = padded_hw * dtype_bytes
    nc_cap = _round_up(nc, _SUBLANE)

    # Largest TM (multiple of 8) whose double-buffered (TM, HW) input tile
    # stays within the budget.
    tm_full = (_INPUT_VMEM_BUDGET // (2 * row_bytes)) // _SUBLANE * _SUBLANE
    use_single_pass = (tm_full >= _SUBLANE) and not force_hw_tiling

    if use_single_pass:
        tm = max(_SUBLANE, min(tm_full, 2048, nc_cap))
        out2d = pl.pallas_call(
            functools.partial(_gap_single_pass_kernel, inv_hw=inv_hw),
            out_shape=jax.ShapeDtypeStruct((nc, 1), x.dtype),
            grid_spec=pltpu.PrefetchScalarGridSpec(
                num_scalar_prefetch=0,
                grid=(pl.cdiv(nc, tm),),
                in_specs=[pl.BlockSpec((tm, hw), lambda i: (i, 0))],
                out_specs=pl.BlockSpec((tm, 1), lambda i: (i, 0)),
            ),
            compiler_params=pltpu.CompilerParams(
                dimension_semantics=("parallel",),
                vmem_limit_bytes=_VMEM_LIMIT_BYTES,
            ),
        )(x2d)
    else:
        # Very large HW: tile the reduction axis, keep an f32 accumulator
        # resident across the (sequential, last) HW grid axis.
        tm = max(_SUBLANE, min(256, nc_cap))
        if hw_tile is not None:
            tk = _round_up(int(hw_tile), _LANE)
        else:
            tk = (_INPUT_VMEM_BUDGET // (2 * tm * dtype_bytes)) // _LANE * _LANE
            tk = min(tk, _round_up(hw, _LANE))
        tk = max(_LANE, tk)

        out2d = pl.pallas_call(
            functools.partial(_gap_accum_kernel, hw=hw, tk=tk, inv_hw=inv_hw),
            out_shape=jax.ShapeDtypeStruct((nc, 1), x.dtype),
            grid_spec=pltpu.PrefetchScalarGridSpec(
                num_scalar_prefetch=0,
                grid=(pl.cdiv(nc, tm), pl.cdiv(hw, tk)),
                in_specs=[pl.BlockSpec((tm, tk), lambda i, k: (i, k))],
                out_specs=pl.BlockSpec((tm, 1), lambda i, k: (i, 0)),
                scratch_shapes=[pltpu.VMEM((tm, 1), jnp.float32)],
            ),
            compiler_params=pltpu.CompilerParams(
                dimension_semantics=("parallel", "arbitrary"),
                vmem_limit_bytes=_VMEM_LIMIT_BYTES,
            ),
        )(x2d)

    return out2d.reshape(n, c, 1, 1)


if __name__ == "__main__":
    key = jax.random.PRNGKey(0)
    N, C, H, W = 2, 4, 16, 16
    x = jax.random.normal(key, (N, C, H, W), dtype=jnp.float32)

    out = global_avg_pool2d(x)
    jax.block_until_ready(out)

    ref = jnp.mean(x, axis=(2, 3), keepdims=True)
    assert out.shape == (N, C, 1, 1), out.shape
    assert jnp.allclose(out, ref, atol=1e-5, rtol=1e-5), "mismatch vs reference"

    # Also exercise the HW-tiled accumulator path (used for very large spatial
    # extents) on a small input with both a partial NC tile and a partial
    # (masked) last HW tile.
    x2 = jax.random.normal(jax.random.PRNGKey(1), (2, 3, 10, 15), dtype=jnp.float32)
    out2 = global_avg_pool2d(x2, force_hw_tiling=True, hw_tile=128)
    jax.block_until_ready(out2)
    ref2 = jnp.mean(x2, axis=(2, 3), keepdims=True)
    assert out2.shape == (2, 3, 1, 1), out2.shape
    assert jnp.allclose(out2, ref2, atol=1e-5, rtol=1e-5), "mismatch (accum path)"

    print("KERNEL_OK")
</pallas_src>

<mosaic_0001>
module attributes {stable_mosaic.version = 11 : i64} {
  func.func @_gap_single_pass_kernel(%arg0: i32, %arg1: memref<8x256xf32, #tpu.memory_space<vmem>>, %arg2: memref<8x1xf32, #tpu.memory_space<vmem>>) attributes {dimension_semantics = [#tpu.dimension_semantics<parallel>], iteration_bounds = array<i64: 1>, scalar_prefetch = 0 : i64, scratch_operands = 0 : i64, tpu.core_type = #tpu.core_type<tc>, window_params = [{transform_indices = @transform_0, window_bounds = array<i64: 8, 256>}, {transform_indices = @transform_1, window_bounds = array<i64: 8, 1>}]} {
    %c0 = arith.constant 0 : index
    %c0_0 = arith.constant 0 : index
    %0 = vector.load %arg1[%c0, %c0_0] : memref<8x256xf32, #tpu.memory_space<vmem>>, vector<8x256xf32>
    %cst = arith.constant dense<0.000000e+00> : vector<8xf32>
    %1 = vector.multi_reduction <add>, %0, %cst [1] : vector<8x256xf32> to vector<8xf32>
    %2 = vector.shape_cast %1 : vector<8xf32> to vector<8x1xf32>
    %cst_1 = arith.constant 3.906250e-03 : f32
    %3 = vector.broadcast %cst_1 : f32 to vector<8x1xf32>
    %4 = arith.mulf %2, %3 : vector<8x1xf32>
    %c0_2 = arith.constant 0 : index
    %c0_3 = arith.constant 0 : index
    %5 = vector.load %arg2[%c0_2, %c0_3] : memref<8x1xf32, #tpu.memory_space<vmem>>, vector<8x1xf32>
    tpu.vector_store %arg2[%c0_2, %c0_3], %4 {strides = array<i32>} : memref<8x1xf32, #tpu.memory_space<vmem>>, vector<8x1xf32>,
    return
  }
  func.func @transform_0(%arg0: i32) -> (i32, i32) {
    %c0_i32 = arith.constant 0 : i32
    %c0_i32_0 = arith.constant 0 : i32
    return %arg0, %c0_i32 : i32, i32
  }
  func.func @transform_1(%arg0: i32) -> (i32, i32) {
    %c0_i32 = arith.constant 0 : i32
    %c0_i32_0 = arith.constant 0 : i32
    return %arg0, %c0_i32 : i32, i32
  }
}

</mosaic_0001>

<bundles_post_ra>
// kernel: tpu_custom_call.1
= control target key start
LH: loop header
LB: loop body
LE: loop exit
PB: predicated region body
PF: predicated region fallthrough
CT: control target
= control target key end

     0   :  { %6 = vsyncpa [#allocation3], 0  ;;  %s62_s9 = smov [#allocation2]   ;;  %s79_s0 = inlined_call_operand.hbm [shape: f32[8,256], index: 0, kind: input, shape index: {}]   ;;  %s80_s1 = inlined_call_operand.vmem [shape: f32[8,1], index: 1, kind: output, shape index: {}]  }
   0x1   :  { %s12_s8 = sshll.u32 %s79_s0, 4  ;;  %s14_s10 = sshll.u32 %s62_s9, 4  ;;  %s13_s8 = int_to_ptr.hbm [resolvable:$true] %s12_s8  ;;  %s15_s10 = int_to_ptr.vmem [resolvable:$true] %s14_s10 }
   0x2   :  { %17 = dma.hbm_to_vmem [thread:$0]  %s13_s8, 256, %s15_s10, [#allocation3]  }
   0x3   :  { %60 = dma.done.wait [#allocation3], 256  }
   0x4   :  { %61 = vsyncadd [#allocation3], 4294967040  ;;  %v22_v0 = vld [vmem:[#allocation2] sm:$0xff]  ;;  %v23_v1 = vld [vmem:[#allocation2 + $0x8] sm:$0xff]  ;;  %vm28_vm0 = vcmask 7168  }
   0x5   :  { %v24_v2 = vadd.f32 %v23_v1, %v22_v0 }
   0x7   :  { %25 = vadd.xlane.f32.xlu0 %v24_v2 }
  0x7a   :  { %v26_v3 = vpop.xlane.xlu0 %25 }
  0x7b   :  { %v27_v4 = vmul.f32 0.00390625, %v26_v3 }
  0x7d   :  { %29 = vst.msk [vmem:[%s80_s1] sm:$0xff] %vm28_vm0, %v27_v4 }
  0x7e   :  { %34 = vsyncpa [#allocation3], 1 }

</bundles_post_ra>
